<compile_context>
chip_gen: v7x
topology: tpu7x:2x2x1
jax: 0.10.0
libtpu: 0.0.40
codegen_flags: <defaults>
</compile_context>

<pallas_src>
import jax
import jax.numpy as jnp
from jax.experimental import pallas as pl
from jax.experimental.pallas import tpu as pltpu

# ----------------------------- model sizes ---------------------------------
N = 2            # batch
H = 16           # spatial height
W = 16           # spatial width
CIN = 3          # RGB input channels (module requires 3)
NUM_FTRS = 32    # stand-in for EfficientNetV2-L's 1280-dim feature vector
HIDDEN = 512     # fixed by the module's classifier head
NUM_CLASSES = 10
OUT_PAD = 128    # lane-dense padded class dim (wrapper slices back to 10)
LN_EPS = 1e-5    # torch.nn.LayerNorm default


# ------------------------------- kernel ------------------------------------
def _fused_kernel(x_ref, wc_ref, bc_ref,
                  w1_ref, b1_ref, g_ref, beta_ref,
                  w2_ref, b2_ref, out_ref):
    """Fused: features(1x1 conv + ReLU) -> global avgpool -> Linear(F,512)
       -> LayerNorm(512) -> ReLU -> Dropout(eval: identity) -> Linear(512, C_pad).

       x_ref: (N, CIN, HW) with HW in the lane dim.  out_ref: (N, OUT_PAD)."""
    x = x_ref[...]                                   # (N, 3, HW)
    wc = wc_ref[...]                                 # (F, 3)
    bc = bc_ref[...]                                 # (F, 1)

    # --- stand-in "features": 1x1 conv as 3 broadcast VPU FMAs, then ReLU ---
    feat = x[:, 0:1, :] * wc[:, 0:1][None, :, :]                      # (N, F, HW)
    feat = feat + x[:, 1:2, :] * wc[:, 1:2][None, :, :]
    feat = feat + x[:, 2:3, :] * wc[:, 2:3][None, :, :]
    feat = jnp.maximum(feat + bc[None, :, :], 0.0)                    # (N, F, HW)

    # --- global average pool over the spatial (lane) axis + flatten ---
    pooled = jnp.sum(feat, axis=-1) * (1.0 / (H * W))                 # (N, F)

    # --- classifier: Linear(F, 512) ---
    h = jnp.dot(pooled, w1_ref[...],
                preferred_element_type=jnp.float32) + b1_ref[...]     # (N, 512)

    # --- LayerNorm(512) ---
    mu = jnp.mean(h, axis=-1, keepdims=True)
    d = h - mu
    var = jnp.mean(d * d, axis=-1, keepdims=True)
    h = d * jax.lax.rsqrt(var + LN_EPS)
    h = h * g_ref[...] + beta_ref[...]

    # --- ReLU ---
    h = jnp.maximum(h, 0.0)

    # --- Dropout: identity in eval mode ---
    # TODO(synk): training-mode dropout (pltpu.prng_*) not exercised here.

    # --- Linear(512, num_classes) on a 128-wide zero-padded class dim ---
    logits = jnp.dot(h, w2_ref[...],
                     preferred_element_type=jnp.float32) + b2_ref[...]  # (N, 128)
    out_ref[...] = logits.astype(out_ref.dtype)


# ------------------------------ wrapper -------------------------------------
@jax.jit
def custom_efficientnet_norm_forward(x, kernel_params):
    """Mirrors CustomEfficientNetNormModel.forward (same shape dispatch).

    `kernel_params` must come from prepare_params() (final Linear pre-padded
    to a lane-dense 128-wide class dim)."""
    if x.ndim == 4 and x.shape[3] == 3:
        x = jnp.transpose(x, (0, 3, 1, 2))            # NHWC -> NCHW
    elif x.ndim != 4 or x.shape[1] != 3:
        raise ValueError(f"Unexpected input dimensions: {x.shape}")

    n, c, h, w = x.shape
    x_flat = x.reshape(n, c, h * w)                   # (N, C, HW), lanes = HW

    wc, bc, w1, b1, g, beta, w2p, b2p = kernel_params

    vmem = lambda: pl.BlockSpec(memory_space=pltpu.MemorySpace.VMEM)
    out = pl.pallas_call(
        _fused_kernel,
        out_shape=jax.ShapeDtypeStruct((n, OUT_PAD), jnp.float32),
        in_specs=[vmem() for _ in range(9)],
        out_specs=vmem(),
    )(x_flat, wc, bc, w1, b1, g, beta, w2p, b2p)

    return out[:, :NUM_CLASSES]


def init_params(key):
    """Deterministic parameter init, torch-module shapes (synthetic, no ckpt)."""
    ks = jax.random.split(key, 5)
    wc = jax.random.normal(ks[0], (NUM_FTRS, CIN), jnp.float32) * 0.1    # conv W
    bc = jnp.zeros((NUM_FTRS, 1), jnp.float32)                           # conv b
    w1 = jax.random.normal(ks[1], (NUM_FTRS, HIDDEN), jnp.float32) * 0.05
    b1 = jax.random.normal(ks[2], (1, HIDDEN), jnp.float32) * 0.01
    gamma = jnp.ones((1, HIDDEN), jnp.float32)
    beta = jnp.zeros((1, HIDDEN), jnp.float32)
    w2 = jax.random.normal(ks[3], (HIDDEN, NUM_CLASSES), jnp.float32) * 0.05
    b2 = jax.random.normal(ks[4], (1, NUM_CLASSES), jnp.float32) * 0.01
    return (wc, bc, w1, b1, gamma, beta, w2, b2)


def prepare_params(params):
    """One-time prep: zero-pad the final Linear 10 -> 128 classes so the
    kernel's last matmul and the output store are lane-dense."""
    wc, bc, w1, b1, g, beta, w2, b2 = params
    w2p = jnp.zeros((HIDDEN, OUT_PAD), w2.dtype).at[:, :NUM_CLASSES].set(w2)
    b2p = jnp.zeros((1, OUT_PAD), b2.dtype).at[:, :NUM_CLASSES].set(b2)
    return (wc, bc, w1, b1, g, beta, w2p, b2p)


def _reference(x, params):
    """Pure-JAX forward (same math, plain XLA ops) for validation."""
    if x.ndim == 4 and x.shape[3] == 3:
        x = jnp.transpose(x, (0, 3, 1, 2))
    elif x.ndim != 4 or x.shape[1] != 3:
        raise ValueError(f"Unexpected input dimensions: {x.shape}")
    wc, bc, w1, b1, g, beta, w2, b2 = params
    n, c, h, w = x.shape
    xf = x.reshape(n, c, h * w)
    feat = jnp.maximum(jnp.einsum("fc,nch->nfh", wc, xf) + bc[None, :, :], 0.0)
    pooled = jnp.mean(feat, axis=-1)
    hid = pooled @ w1 + b1
    mu = hid.mean(-1, keepdims=True)
    var = ((hid - mu) ** 2).mean(-1, keepdims=True)
    hid = (hid - mu) * jax.lax.rsqrt(var + LN_EPS) * g + beta
    hid = jnp.maximum(hid, 0.0)
    return hid @ w2 + b2


if __name__ == "__main__":
    key = jax.random.PRNGKey(0)
    kx, kp = jax.random.split(key)

    # NCHW input (N, 3, H, W) — the module's native layout (zero transposes);
    # the NHWC branch (permute) is also handled by the wrapper.
    x = jax.random.normal(kx, (N, CIN, H, W), jnp.float32)
    params = init_params(kp)
    kparams = prepare_params(params)     # one-time lane-dense padding

    out = custom_efficientnet_norm_forward(x, kparams)
    out = jax.block_until_ready(out)

    assert out.shape == (N, NUM_CLASSES), out.shape
    assert jnp.all(jnp.isfinite(out)), "non-finite output"

    ref = _reference(x, params)
    max_err = float(jnp.max(jnp.abs(out - ref)))
    assert jnp.allclose(out, ref, atol=5e-2, rtol=5e-2), max_err

    print("KERNEL_OK")
</pallas_src>

<mosaic_0001>
module attributes {stable_mosaic.version = 11 : i64} {
  func.func @_fused_kernel(%arg0: memref<2x3x256xf32, #tpu.memory_space<vmem>>, %arg1: memref<32x3xf32, #tpu.memory_space<vmem>>, %arg2: memref<32x1xf32, #tpu.memory_space<vmem>>, %arg3: memref<32x512xf32, #tpu.memory_space<vmem>>, %arg4: memref<1x512xf32, #tpu.memory_space<vmem>>, %arg5: memref<1x512xf32, #tpu.memory_space<vmem>>, %arg6: memref<1x512xf32, #tpu.memory_space<vmem>>, %arg7: memref<512x128xf32, #tpu.memory_space<vmem>>, %arg8: memref<1x128xf32, #tpu.memory_space<vmem>>, %arg9: memref<2x128xf32, #tpu.memory_space<vmem>>) attributes {dimension_semantics = [], scalar_prefetch = 0 : i64, scratch_operands = 0 : i64, tpu.core_type = #tpu.core_type<tc>} {
    %c0 = arith.constant 0 : index
    %c0_0 = arith.constant 0 : index
    %c0_1 = arith.constant 0 : index
    %0 = vector.load %arg0[%c0, %c0_0, %c0_1] : memref<2x3x256xf32, #tpu.memory_space<vmem>>, vector<2x3x256xf32>
    %c0_2 = arith.constant 0 : index
    %c0_3 = arith.constant 0 : index
    %1 = vector.load %arg1[%c0_2, %c0_3] : memref<32x3xf32, #tpu.memory_space<vmem>>, vector<32x3xf32>
    %c0_4 = arith.constant 0 : index
    %c0_5 = arith.constant 0 : index
    %2 = vector.load %arg2[%c0_4, %c0_5] : memref<32x1xf32, #tpu.memory_space<vmem>>, vector<32x1xf32>
    %3 = vector.extract_strided_slice %0 {offsets = [0, 0, 0], sizes = [2, 1, 256], strides = [1, 1, 1]} : vector<2x3x256xf32> to vector<2x1x256xf32>
    %4 = vector.extract_strided_slice %1 {offsets = [0, 0], sizes = [32, 1], strides = [1, 1]} : vector<32x3xf32> to vector<32x1xf32>
    %5 = vector.shape_cast %4 : vector<32x1xf32> to vector<1x32x1xf32>
    %6 = vector.broadcast %3 : vector<2x1x256xf32> to vector<2x32x256xf32>
    %7 = vector.broadcast %5 : vector<1x32x1xf32> to vector<2x32x256xf32>
    %8 = arith.mulf %6, %7 : vector<2x32x256xf32>
    %9 = vector.extract_strided_slice %0 {offsets = [0, 1, 0], sizes = [2, 1, 256], strides = [1, 1, 1]} : vector<2x3x256xf32> to vector<2x1x256xf32>
    %10 = vector.extract_strided_slice %1 {offsets = [0, 1], sizes = [32, 1], strides = [1, 1]} : vector<32x3xf32> to vector<32x1xf32>
    %11 = vector.shape_cast %10 : vector<32x1xf32> to vector<1x32x1xf32>
    %12 = vector.broadcast %9 : vector<2x1x256xf32> to vector<2x32x256xf32>
    %13 = vector.broadcast %11 : vector<1x32x1xf32> to vector<2x32x256xf32>
    %14 = arith.mulf %12, %13 : vector<2x32x256xf32>
    %15 = arith.addf %8, %14 : vector<2x32x256xf32>
    %16 = vector.extract_strided_slice %0 {offsets = [0, 2, 0], sizes = [2, 1, 256], strides = [1, 1, 1]} : vector<2x3x256xf32> to vector<2x1x256xf32>
    %17 = vector.extract_strided_slice %1 {offsets = [0, 2], sizes = [32, 1], strides = [1, 1]} : vector<32x3xf32> to vector<32x1xf32>
    %18 = vector.shape_cast %17 : vector<32x1xf32> to vector<1x32x1xf32>
    %19 = vector.broadcast %16 : vector<2x1x256xf32> to vector<2x32x256xf32>
    %20 = vector.broadcast %18 : vector<1x32x1xf32> to vector<2x32x256xf32>
    %21 = arith.mulf %19, %20 : vector<2x32x256xf32>
    %22 = arith.addf %15, %21 : vector<2x32x256xf32>
    %23 = vector.shape_cast %2 : vector<32x1xf32> to vector<1x32x1xf32>
    %24 = vector.broadcast %23 : vector<1x32x1xf32> to vector<2x32x256xf32>
    %25 = arith.addf %22, %24 : vector<2x32x256xf32>
    %cst = arith.constant 0.000000e+00 : f32
    %26 = vector.broadcast %cst : f32 to vector<2x32x256xf32>
    %27 = arith.maximumf %25, %26 : vector<2x32x256xf32>
    %cst_6 = arith.constant dense<0.000000e+00> : vector<2x32xf32>
    %28 = vector.multi_reduction <add>, %27, %cst_6 [2] : vector<2x32x256xf32> to vector<2x32xf32>
    %cst_7 = arith.constant 3.906250e-03 : f32
    %29 = vector.broadcast %cst_7 : f32 to vector<2x32xf32>
    %30 = arith.mulf %28, %29 : vector<2x32xf32>
    %c0_8 = arith.constant 0 : index
    %c0_9 = arith.constant 0 : index
    %31 = vector.load %arg3[%c0_8, %c0_9] : memref<32x512xf32, #tpu.memory_space<vmem>>, vector<32x512xf32>
    %cst_10 = arith.constant dense<0.000000e+00> : vector<2x512xf32>
    %32 = tpu.matmul %30, %31, %cst_10 {dimension_numbers = #tpu.dot_dimension_numbers<[1], [0], [0], [1], [0, 0, 1, 1], [], []>} : vector<2x32xf32>, vector<32x512xf32>, vector<2x512xf32> -> vector<2x512xf32>
    %c0_11 = arith.constant 0 : index
    %c0_12 = arith.constant 0 : index
    %33 = vector.load %arg4[%c0_11, %c0_12] : memref<1x512xf32, #tpu.memory_space<vmem>>, vector<1x512xf32>
    %34 = vector.broadcast %33 : vector<1x512xf32> to vector<2x512xf32>
    %35 = arith.addf %32, %34 : vector<2x512xf32>
    %cst_13 = arith.constant dense<0.000000e+00> : vector<2xf32>
    %36 = vector.multi_reduction <add>, %35, %cst_13 [1] : vector<2x512xf32> to vector<2xf32>
    %37 = vector.shape_cast %36 : vector<2xf32> to vector<2x1xf32>
    %cst_14 = arith.constant 5.120000e+02 : f32
    %38 = vector.broadcast %cst_14 : f32 to vector<2x1xf32>
    %39 = arith.divf %37, %38 : vector<2x1xf32>
    %40 = vector.broadcast %39 : vector<2x1xf32> to vector<2x512xf32>
    %41 = arith.subf %35, %40 : vector<2x512xf32>
    %42 = arith.mulf %41, %41 : vector<2x512xf32>
    %cst_15 = arith.constant dense<0.000000e+00> : vector<2xf32>
    %43 = vector.multi_reduction <add>, %42, %cst_15 [1] : vector<2x512xf32> to vector<2xf32>
    %44 = vector.shape_cast %43 : vector<2xf32> to vector<2x1xf32>
    %cst_16 = arith.constant 5.120000e+02 : f32
    %45 = vector.broadcast %cst_16 : f32 to vector<2x1xf32>
    %46 = arith.divf %44, %45 : vector<2x1xf32>
    %cst_17 = arith.constant 9.99999974E-6 : f32
    %47 = vector.broadcast %cst_17 : f32 to vector<2x1xf32>
    %48 = arith.addf %46, %47 : vector<2x1xf32>
    %49 = math.rsqrt %48 : vector<2x1xf32>
    %50 = vector.broadcast %49 : vector<2x1xf32> to vector<2x512xf32>
    %51 = arith.mulf %41, %50 : vector<2x512xf32>
    %c0_18 = arith.constant 0 : index
    %c0_19 = arith.constant 0 : index
    %52 = vector.load %arg5[%c0_18, %c0_19] : memref<1x512xf32, #tpu.memory_space<vmem>>, vector<1x512xf32>
    %53 = vector.broadcast %52 : vector<1x512xf32> to vector<2x512xf32>
    %54 = arith.mulf %51, %53 : vector<2x512xf32>
    %c0_20 = arith.constant 0 : index
    %c0_21 = arith.constant 0 : index
    %55 = vector.load %arg6[%c0_20, %c0_21] : memref<1x512xf32, #tpu.memory_space<vmem>>, vector<1x512xf32>
    %56 = vector.broadcast %55 : vector<1x512xf32> to vector<2x512xf32>
    %57 = arith.addf %54, %56 : vector<2x512xf32>
    %cst_22 = arith.constant 0.000000e+00 : f32
    %58 = vector.broadcast %cst_22 : f32 to vector<2x512xf32>
    %59 = arith.maximumf %57, %58 : vector<2x512xf32>
    %c0_23 = arith.constant 0 : index
    %c0_24 = arith.constant 0 : index
    %60 = vector.load %arg7[%c0_23, %c0_24] : memref<512x128xf32, #tpu.memory_space<vmem>>, vector<512x128xf32>
    %cst_25 = arith.constant dense<0.000000e+00> : vector<2x128xf32>
    %61 = tpu.matmul %59, %60, %cst_25 {dimension_numbers = #tpu.dot_dimension_numbers<[1], [0], [0], [1], [0, 0, 1, 1], [], []>} : vector<2x512xf32>, vector<512x128xf32>, vector<2x128xf32> -> vector<2x128xf32>
    %c0_26 = arith.constant 0 : index
    %c0_27 = arith.constant 0 : index
    %62 = vector.load %arg8[%c0_26, %c0_27] : memref<1x128xf32, #tpu.memory_space<vmem>>, vector<1x128xf32>
    %63 = vector.broadcast %62 : vector<1x128xf32> to vector<2x128xf32>
    %64 = arith.addf %61, %63 : vector<2x128xf32>
    %c0_28 = arith.constant 0 : index
    %c0_29 = arith.constant 0 : index
    %65 = vector.load %arg9[%c0_28, %c0_29] : memref<2x128xf32, #tpu.memory_space<vmem>>, vector<2x128xf32>
    tpu.vector_store %arg9[%c0_28, %c0_29], %64 {strides = array<i32>} : memref<2x128xf32, #tpu.memory_space<vmem>>, vector<2x128xf32>,
    return
  }
}

</mosaic_0001>

<bundles_post_ra>
// kernel: custom_efficientnet_norm_forward.1
= control target key start
LH: loop header
LB: loop body
LE: loop exit
PB: predicated region body
PF: predicated region fallthrough
CT: control target
= control target key end

     0   :  { %14 = vsyncpa [#allocation3], 0  ;;  %s1479_s0 = inlined_call_operand.vmem [shape: f32[2,3,256], index: 0, kind: input, shape index: {}]   ;;  %s1480_s1 = inlined_call_operand.vmem [shape: f32[32,3], index: 1, kind: input, shape index: {}]   ;;  %s1481_s2 = inlined_call_operand.vmem [shape: f32[32,1], index: 2, kind: input, shape index: {}]   ;;  %s1482_s3 = inlined_call_operand.vmem [shape: f32[32,512], index: 3, kind: input, shape index: {}]   ;;  %s1483_s4 = inlined_call_operand.vmem [shape: f32[1,512], index: 4, kind: input, shape index: {}]   ;;  %s1484_s5 = inlined_call_operand.vmem [shape: f32[1,512], index: 5, kind: input, shape index: {}]   ;;  %s1485_s6 = inlined_call_operand.vmem [shape: f32[1,512], index: 6, kind: input, shape index: {}]   ;;  %s1486_s7 = inlined_call_operand.hbm [shape: f32[512,128], index: 7, kind: input, shape index: {}]   ;;  %s1487_s8 = inlined_call_operand.vmem [shape: f32[1,128], index: 8, kind: input, shape index: {}]   ;;  %s1488_s9 = inlined_call_operand.hbm [shape: f32[2,128], index: 9, kind: output, shape index: {}]  }
   0x1   :  { %15 = vsyncpa [#allocation4], 0  ;;  %s1157_s30 = smov [#allocation2]   ;;  %s1109_s13 = scalar_lea.hbm %s1486_s7, 8192 }
   0x2   :  { %s35_s10 = sshll.u32 %s1157_s30, 4  ;;  %p1110_p0 = scmp.ne.s32.totalorder %s1486_s7, %s1109_s13  ;;  %s36_s10 = int_to_ptr.vmem [resolvable:$true] %s35_s10 }
   0x3   :  { %p1113_p1 = scmp.lt.u32.totalorder %s1109_s13, %s1486_s7 }
   0x5   :  { %p1115_p2 = pnand %p1113_p1, %p1110_p0 }
   0x7   :  { %1118 = shalt.err (!%p1115_p2)
}
   0x8   :  { %s1119_s18 = scalar_lea.vmem %s36_s10, 8192  ;;  %p1124_p4 = scmp.lt.s32.totalorder %s36_s10, %s36_s10 }
   0x9   :  { %p1120_p3 = scmp.ne.s32.totalorder %s36_s10, %s1119_s18  ;;  %p1125_p5 = scmp.lt.s32.totalorder %s1119_s18, %s1119_s18 }
   0xb   :  { %p1126_p6 = por %p1125_p5, %p1124_p4 }
   0xd   :  { %p1127_p7 = pnand %p1126_p6, %p1120_p3 }
   0xf   :  { %1130 = shalt.err (!%p1127_p7)
}
  0x10   :  { %s1158_s19 = smov 128   ;;  %s1159_s20 = smov 8  }
  0x11   :  { %41 = dma.hbm_to_vmem [thread:$0]  %s1486_s7, 8192, %s36_s10, [#allocation3], %s1158_s19, %s1158_s19, %s1159_s20  }
  0x12   :  { %1153 = dma.done.wait [#allocation3], 8192  }
  0x13   :  { %1154 = vsyncadd [#allocation3], 4294959104  ;;  %v1160_v0 = vmov 2   ;;  %v1161_v1 = vmov 1   ;;  %v49_v2 = vld [vmem:[%s1480_s1] sm:$0xff]  ;;  %v52_v3 = vld [vmem:[%s1480_s1 + $0x18] sm:$0xff]  ;;  %v1489_v11 = vlaneseq }
  0x14   :  { %1103 = vset.pattern.permute.xlu0 %v1160_v0  ;;  %1102 = vset.pattern.permute.xlu1 %v1161_v1  ;;  %v50_v4 = vld [vmem:[%s1480_s1 + $0x8] sm:$0xff]  ;;  %v51_v5 = vld [vmem:[%s1480_s1 + $0x10] sm:$0xff]  ;;  %v1162_v6 = vmov 0   ;;  %v53_v8 = vld [vmem:[%s1481_s2] sm:$0xff]  ;;  %vm440_vm0 = vcmask 130112   ;;  %vm447_vm1 = vcmask 195712  }
  0x15   :  { %252 = vperm.xlu0 %1103, %v49_v2   ;;  %168 = vperm.xlu1 %1102, %v49_v2   ;;  %v54_v7 = vld [vmem:[%s1481_s2 + $0x8] sm:$0xff]  ;;  %v55_v9 = vld [vmem:[%s1481_s2 + $0x10] sm:$0xff]  ;;  %v56_v10 = vld [vmem:[%s1481_s2 + $0x18] sm:$0xff]  ;;  %v1252_v12 = vshrl.u32 %v1489_v11, 7  ;;  %vm454_vm2 = vcmask 261312   ;;  %vm475_vm3 = vcmask 1041409  }
  0x16   :  { %v47_v15 = vld [vmem:[%s1479_s0] sm:$0x77]  ;;  %v48_v18 = vld [vmem:[%s1479_s0 + $0x8] sm:$0x77]  ;;  %vm477_vm4 = vcmask 261120   ;;  %vm622_vm5 = vcmask 1041408  }
  0x17   :  { %v1255_v13 = vsub.s32 1, %v1252_v12  ;;  %v137_v14 = vsub.s32 5, %v1252_v12  ;;  %v1262_v16 = vsub.s32 2, %v1252_v12  ;;  %v1265_v17 = vsub.s32 0, %v1252_v12  ;;  %s1164_s7 = smov [#allocation5]  }
  0x18   :  { %v221_v19 = vsub.s32 6, %v1252_v12  ;;  %v65_v20 = vsub.s32 4, %v1252_v12  ;;  %s932_s29 = sshll.u32 %s1164_s7, 4  ;;  %s933_s29 = int_to_ptr.vmem [resolvable:$true] %s932_s29 }
  0x19   :  { %264 = vperm.xlu0 %1103, %v52_v3   ;;  %172 = vperm.xlu1 %1102, %v50_v4   ;;  %1492 = vst [vmem:[#allocation8_spill] sm:$0xff] %v1255_v13  ;;  %v134_v23 = vrot.slane %v47_v15, %v1255_v13  ;;  %v138_v24 = vrot.slane %v47_v15, %v137_v14  ;;  %s1131_s30 = scalar_lea.vmem %s933_s29, 32  ;;  %p1136_p9 = scmp.lt.s32.totalorder %s933_s29, %s933_s29 }
  0x1a   :  { %v142_v25 = vrot.slane %v48_v18, %v1255_v13  ;;  %v146_v26 = vrot.slane %v48_v18, %v137_v14  ;;  %v218_v27 = vrot.slane %v47_v15, %v1262_v16  ;;  %v62_v28 = vrot.slane %v47_v15, %v1265_v17  ;;  %p1132_p8 = scmp.ne.s32.totalorder %s933_s29, %s1131_s30  ;;  %p1137_p10 = scmp.lt.s32.totalorder %s1131_s30, %s1131_s30 }
  0x1b   :  { %v222_v29 = vrot.slane %v47_v15, %v221_v19  ;;  %v226_v30 = vrot.slane %v48_v18, %v1262_v16  ;;  %v66_v31 = vrot.slane %v47_v15, %v65_v20  ;;  %v70_v32 = vrot.slane %v48_v18, %v1265_v17 }
  0x1c   :  { %v230_v33 = vrot.slane %v48_v18, %v221_v19  ;;  %v74_v36 = vrot.slane %v48_v18, %v65_v20  ;;  %v154_v37 = vrot.slane %v134_v23, %v1255_v13  ;;  %v158_v38 = vrot.slane %v138_v24, %v1255_v13  ;;  %p1138_p11 = por %p1137_p10, %p1136_p9 }
  0x1d   :  { %1105 = vset.pattern.permute.xlu0 %v1162_v6  ;;  %176 = vperm.xlu1 %1102, %v51_v5   ;;  %v162_v39 = vrot.slane %v142_v25, %v1255_v13  ;;  %v166_v40 = vrot.slane %v146_v26, %v1255_v13  ;;  %v1285_v41 = vrot.slane %v218_v27, %v1262_v16 }
  0x1e   :  { %97 = vperm.xlu0 %1105, %v49_v2   ;;  %v1288_v42 = vrot.slane %v62_v28, %v1265_v17  ;;  %v1291_v43 = vrot.slane %v222_v29, %v1262_v16  ;;  %v1294_v44 = vrot.slane %v226_v30, %v1262_v16  ;;  %v1297_v45 = vrot.slane %v66_v31, %v1265_v17  ;;  %p1139_p12 = pnand %p1138_p11, %p1132_p8 }
  0x1f   :  { %v1300_v46 = vrot.slane %v70_v32, %v1265_v17  ;;  %v1303_v47 = vrot.slane %v230_v33, %v1262_v16  ;;  %v1306_v49 = vrot.slane %v74_v36, %v1265_v17 }
  0x21   :  { %180 = vperm.xlu1 %1102, %v52_v3  }
  0x22   :  { %102 = vperm.xlu0 %1105, %v50_v4  }
  0x25   :  { %1104 = vset.pattern.permute.xlu1 %v1160_v0 }
  0x26   :  { %107 = vperm.xlu0 %1105, %v51_v5   ;;  %256 = vperm.xlu1 %1104, %v50_v4  }
  0x2a   :  { %112 = vperm.xlu0 %1105, %v52_v3   ;;  %260 = vperm.xlu1 %1104, %v51_v5  }
  0x2e   :  { %306 = vperm.xlu0 %1105, %v54_v7   ;;  %1106 = vset.pattern.permute.xlu1 %v1162_v6 }
  0x2f   :  { %301 = vperm.xlu1 %1106, %v53_v8  }
  0x33   :  { %311 = vperm.xlu1 %1106, %v55_v9  }
  0x37   :  { %316 = vperm.xlu1 %1106, %v56_v10  }
  0x94   :  { %v169_v21 = vpop.permute.xlu1 %168  ;;  %v253_v22 = vpop.permute.xlu0 %252 }
  0x95   :  { %v183_v50 = vmul.f32 %v169_v21, %v154_v37  ;;  %v184_v51 = vmul.f32 %v169_v21, %v158_v38  ;;  %v191_v53 = vmul.f32 %v169_v21, %v162_v39  ;;  %v192_v54 = vmul.f32 %v169_v21, %v166_v40 }
  0x96   :  { %v267_v55 = vmul.f32 %v253_v22, %v1285_v41  ;;  %v268_v57 = vmul.f32 %v253_v22, %v1291_v43  ;;  %v275_v58 = vmul.f32 %v253_v22, %v1294_v44  ;;  %v276_v61 = vmul.f32 %v253_v22, %v1303_v47 }
  0x98   :  { %v173_v34 = vpop.permute.xlu1 %172  ;;  %v1278_v35 = vpop.permute.xlu0 %264 }
  0x99   :  { %v185_v62 = vmul.f32 %v173_v34, %v154_v37  ;;  %v186_v63 = vmul.f32 %v173_v34, %v158_v38  ;;  %v193_v2 = vmul.f32 %v173_v34, %v162_v39  ;;  %v194_v3 = vmul.f32 %v173_v34, %v166_v40 }
  0x9a   :  { %v1318_v4 = vmul.f32 %v1278_v35, %v1285_v41  ;;  %v1322_v5 = vmul.f32 %v1278_v35, %v1291_v43  ;;  %v1326_v7 = vmul.f32 %v1278_v35, %v1294_v44 }
  0x9c   :  { %v177_v48 = vpop.permute.xlu1 %176 }
  0x9d   :  { %v98_v52 = vpop.permute.xlu0 %97  ;;  %v187_v8 = vmul.f32 %v177_v48, %v154_v37  ;;  %v188_v9 = vmul.f32 %v177_v48, %v158_v38  ;;  %v195_v14 = vmul.f32 %v177_v48, %v162_v39  ;;  %v196_v15 = vmul.f32 %v177_v48, %v166_v40 }
  0x9e   :  { %v115_v56 = vmul.f32 %v98_v52, %v1288_v42  ;;  %v116_v59 = vmul.f32 %v98_v52, %v1297_v45  ;;  %v123_v60 = vmul.f32 %v98_v52, %v1300_v46  ;;  %v124_v0 = vmul.f32 %v98_v52, %v1306_v49 }
  0xa0   :  { %v181_v1 = vpop.permute.xlu1 %180  ;;  %v199_v10 = vadd.f32 %v183_v50, %v115_v56  ;;  %v200_v18 = vadd.f32 %v184_v51, %v116_v59  ;;  %v207_v19 = vadd.f32 %v191_v53, %v123_v60  ;;  %v208_v20 = vadd.f32 %v192_v54, %v124_v0 }
  0xa1   :  { %v103_v6 = vpop.permute.xlu0 %102  ;;  %v189_v21 = vmul.f32 %v181_v1, %v154_v37  ;;  %v190_v22 = vmul.f32 %v181_v1, %v158_v38  ;;  %v1328_v23 = vmul.f32 %v181_v1, %v162_v39  ;;  %v1330_v24 = vmul.f32 %v181_v1, %v166_v40 }
  0xa2   :  { %v117_v25 = vmul.f32 %v103_v6, %v1288_v42  ;;  %v118_v26 = vmul.f32 %v103_v6, %v1297_v45  ;;  %v125_v27 = vmul.f32 %v103_v6, %v1300_v46  ;;  %v126_v30 = vmul.f32 %v103_v6, %v1306_v49 }
  0xa3   :  { %v283_v33 = vadd.f32 %v267_v55, %v199_v10  ;;  %v284_v48 = vadd.f32 %v268_v57, %v200_v18  ;;  %v291_v50 = vadd.f32 %v275_v58, %v207_v19  ;;  %v292_v55 = vadd.f32 %v276_v61, %v208_v20 }
  0xa4   :  { %v201_v51 = vadd.f32 %v185_v62, %v117_v25  ;;  %v202_v52 = vadd.f32 %v186_v63, %v118_v26  ;;  %v209_v53 = vadd.f32 %v193_v2, %v125_v27  ;;  %v210_v59 = vadd.f32 %v194_v3, %v126_v30 }
  0xa5   :  { %v108_v28 = vpop.permute.xlu0 %107  ;;  %v257_v29 = vpop.permute.xlu1 %256 }
  0xa6   :  { %v119_v31 = vmul.f32 %v108_v28, %v1288_v42  ;;  %v120_v32 = vmul.f32 %v108_v28, %v1297_v45  ;;  %v127_v34 = vmul.f32 %v108_v28, %v1300_v46  ;;  %v128_v36 = vmul.f32 %v108_v28, %v1306_v49 }
  0xa7   :  { %v269_v37 = vmul.f32 %v257_v29, %v1285_v41  ;;  %v270_v38 = vmul.f32 %v257_v29, %v1291_v43  ;;  %v277_v39 = vmul.f32 %v257_v29, %v1294_v44  ;;  %v278_v40 = vmul.f32 %v257_v29, %v1303_v47 }
  0xa8   :  { %v203_v60 = vadd.f32 %v187_v8, %v119_v31  ;;  %v204_v0 = vadd.f32 %v188_v9, %v120_v32  ;;  %v211_v6 = vadd.f32 %v195_v14, %v127_v34  ;;  %v212_v10 = vadd.f32 %v196_v15, %v128_v36 }
  0xa9   :  { %v113_v54 = vpop.permute.xlu0 %112  ;;  %v261_v56 = vpop.permute.xlu1 %260  ;;  %v285_v28 = vadd.f32 %v269_v37, %v201_v51  ;;  %v286_v11 = vadd.f32 %v270_v38, %v202_v52  ;;  %v293_v58 = vadd.f32 %v277_v39, %v209_v53  ;;  %v294_v62 = vadd.f32 %v278_v40, %v210_v59 }
  0xaa   :  { %v121_v1 = vmul.f32 %v113_v54, %v1288_v42  ;;  %v122_v13 = vmul.f32 %v113_v54, %v1297_v45  ;;  %v271_v57 = vmul.f32 %v261_v56, %v1285_v41  ;;  %v129_v63 = vmul.f32 %v113_v54, %v1300_v46 }
  0xab   :  { %v130_v2 = vmul.f32 %v113_v54, %v1306_v49  ;;  %v272_v61 = vmul.f32 %v261_v56, %v1291_v43  ;;  %v279_v3 = vmul.f32 %v261_v56, %v1294_v44  ;;  %v280_v9 = vmul.f32 %v261_v56, %v1303_v47 }
  0xac   :  { %v205_v42 = vadd.f32 %v189_v21, %v121_v1  ;;  %v206_v25 = vadd.f32 %v190_v22, %v122_v13  ;;  %v287_v27 = vadd.f32 %v271_v57, %v203_v60  ;;  %v213_v13 = vadd.f32 %v1328_v23, %v129_v63 }
  0xad   :  { %v307_v8 = vpop.permute.xlu0 %306  ;;  %v288_v43 = vadd.f32 %v272_v61, %v204_v0  ;;  %v214_v22 = vadd.f32 %v1330_v24, %v130_v2  ;;  %v295_v38 = vadd.f32 %v279_v3, %v211_v6  ;;  %v296_v39 = vadd.f32 %v280_v9, %v212_v10  ;;  %v384_v61 = vld [vmem:[%s1482_s3 + $0x8] sm:$0xff]  ;;  %v386_v3 = vld [vmem:[%s1482_s3 + $0x18] sm:$0xff]  ;;  %v383_v9 = vld [vmem:[%s1482_s3] sm:$0xff] }
  0xae   :  { %v302_v14 = vpop.permute.xlu1 %301  ;;  %v321_v15 = vadd.f32 %v307_v8, %v285_v28  ;;  %v322_v18 = vadd.f32 %v307_v8, %v286_v11  ;;  %v329_v30 = vadd.f32 %v307_v8, %v293_v58  ;;  %v330_v34 = vadd.f32 %v307_v8, %v294_v62 }
  0xaf   :  { %v319_v45 = vadd.f32 %v302_v14, %v283_v33  ;;  %v320_v19 = vadd.f32 %v302_v14, %v284_v48  ;;  %v327_v41 = vadd.f32 %v302_v14, %v291_v50  ;;  %v328_v20 = vadd.f32 %v302_v14, %v292_v55  ;;  %v387_v14 = vld [vmem:[%s1482_s3 + $0x20] sm:$0xff] }
  0xb0   :  { %v337_v26 = vmax.f32 %v321_v15, 0.0  ;;  %v338_v46 = vmax.f32 %v322_v18, 0.0  ;;  %v282_v11 = vmul.f32 %v1278_v35, %v1303_v47  ;;  %v289_v50 = vadd.f32 %v1318_v4, %v205_v42  ;;  %v390_v42 = vld [vmem:[%s1482_s3 + $0x38] sm:$0xff] }
  0xb1   :  { %v335_v49 = vmax.f32 %v319_v45, 0.0  ;;  %v336_v29 = vmax.f32 %v320_v19, 0.0  ;;  %v343_v21 = vmax.f32 %v327_v41, 0.0  ;;  %v344_v32 = vmax.f32 %v328_v20, 0.0  ;;  %v385_v45 = vld [vmem:[%s1482_s3 + $0x10] sm:$0xff]  ;;  %v392_v41 = vld [vmem:[%s1482_s3 + $0x48] sm:$0xff] }
  0xb2   :  { %v312_v44 = vpop.permute.xlu1 %311  ;;  %v354_v31 = vadd.f32 %v338_v46, %v337_v26  ;;  %v290_v51 = vadd.f32 %v1322_v5, %v206_v25  ;;  %v345_v35 = vmax.f32 %v329_v30, 0.0  ;;  %v346_v47 = vmax.f32 %v330_v34, 0.0  ;;  %v389_v19 = vld [vmem:[%s1482_s3 + $0x30] sm:$0xff]  ;;  %v396_v25 = vld [vmem:[%s1482_s3 + $0x68] sm:$0xff]  ;;  %v394_v26 = vld [vmem:[%s1482_s3 + $0x58] sm:$0xff] }
  0xb3   :  { %v351_v33 = vadd.f32 %v336_v29, %v335_v49  ;;  %v323_v36 = vadd.f32 %v312_v44, %v287_v27  ;;  %v324_v37 = vadd.f32 %v312_v44, %v288_v43  ;;  %v363_v53 = vadd.f32 %v344_v32, %v343_v21  ;;  %v398_v46 = vld [vmem:[%s1482_s3 + $0x78] sm:$0xff]  ;;  %v391_v43 = vld [vmem:[%s1482_s3 + $0x40] sm:$0xff]  ;;  %v397_v21 = vld [vmem:[%s1482_s3 + $0x70] sm:$0xff] }
  0xb4   :  { %355 = vadd.xlane.f32.xlu1 %v354_v31  ;;  %v331_v54 = vadd.f32 %v312_v44, %v295_v38  ;;  %v332_v59 = vadd.f32 %v312_v44, %v296_v39  ;;  %v297_v0 = vadd.f32 %v1326_v7, %v213_v13  ;;  %v298_v1 = vadd.f32 %v282_v11, %v214_v22  ;;  %v388_v7 = vld [vmem:[%s1482_s3 + $0x28] sm:$0xff]  ;;  %v395_v30 = vld [vmem:[%s1482_s3 + $0x60] sm:$0xff]  ;;  %v393_v44 = vld [vmem:[%s1482_s3 + $0x50] sm:$0xff] }
  0xb5   :  { %352 = vadd.xlane.f32.xlu0 %v351_v33  ;;  %v339_v40 = vmax.f32 %v323_v36, 0.0  ;;  %v340_v48 = vmax.f32 %v324_v37, 0.0  ;;  %v366_v6 = vadd.f32 %v346_v47, %v345_v35  ;;  %v1014_v8 = vpack.c.bf16 %v388_v7, %v384_v61 }
  0xb6   :  { %v317_v52 = vpop.permute.xlu1 %316  ;;  %v347_v4 = vmax.f32 %v331_v54, 0.0  ;;  %v348_v5 = vmax.f32 %v332_v59, 0.0  ;;  %v1022_v15 = vpack.c.bf16 %v390_v42, %v386_v3  ;;  %v1016_v18 = vpack.c.bf16 %v387_v14, %v383_v9  ;;  %v399_v42 = vld [vmem:[%s1483_s4] sm:$0xf] }
  0xb7   :  { %v357_v56 = vadd.f32 %v340_v48, %v339_v40  ;;  %v325_v55 = vadd.f32 %v317_v52, %v289_v50  ;;  %v326_v23 = vadd.f32 %v317_v52, %v290_v51  ;;  %v333_v28 = vadd.f32 %v317_v52, %v297_v0  ;;  %1015 = vmatprep.subr.bf16.mxu0 %v1014_v8 }
  0xb8   :  { %v334_v57 = vadd.f32 %v317_v52, %v298_v1  ;;  %v369_v58 = vadd.f32 %v348_v5, %v347_v4  ;;  %v1024_v20 = vpack.c.bf16 %v389_v19, %v385_v45  ;;  %v1163_v27 = vmov 0.0   ;;  %1023 = vmatprep.subr.bf16.mxu1 %v1022_v15  ;;  %1017 = vmatpush1.bf16.msra.mxu0 %v1016_v18  ;;  %v1494_v18 = vld [vmem:[#allocation8_spill] sm:$0xff] }
  0xb9   :  { %358 = vadd.xlane.f32.xlu1 %v357_v56  ;;  %364 = vadd.xlane.f32.xlu0 %v363_v53  ;;  %v341_v24 = vmax.f32 %v325_v55, 0.0  ;;  %v342_v60 = vmax.f32 %v326_v23, 0.0  ;;  %v349_v62 = vmax.f32 %v333_v28, 0.0  ;;  %v1018_v49 = vpack.c.bf16 %v396_v25, %v392_v41 }
  0xba   :  { %v350_v63 = vmax.f32 %v334_v57, 0.0  ;;  %544 = vmatprep.mubr.f32.mxu0 %v1163_v27  ;;  %v1026_v29 = vpack.c.bf16 %v398_v46, %v394_v26  ;;  %1025 = vmatpush1.bf16.msra.mxu1 %v1024_v20  ;;  %v1020_v31 = vpack.c.bf16 %v395_v30, %v391_v43  ;;  %v1028_v32 = vpack.c.bf16 %v397_v21, %v393_v44 }
  0xbb   :  { %v360_v10 = vadd.f32 %v342_v60, %v341_v24  ;;  %615 = vmatprep.mubr.f32.mxu1 %v1163_v27  ;;  %1019 = vmatprep.subr.bf16.mxu0 %v1018_v49  ;;  %v1493_v33 = vlaneseq  ;;  %v1416_v9 = vsub.s32 3, %v1252_v12  ;;  %v404_v14 = vrot.slane %v399_v42, %v1265_v17 }
  0xbc   :  { %v372_v2 = vadd.f32 %v350_v63, %v349_v62  ;;  %1027 = vmatprep.subr.bf16.mxu1 %v1026_v29  ;;  %1021 = vmatpush1.bf16.msra.mxu0 %v1020_v31  ;;  %v412_v15 = vrot.slane %v399_v42, %v1262_v16  ;;  %v408_v45 = vrot.slane %v399_v42, %v1494_v18 }
  0xbd   :  { %361 = vadd.xlane.f32.xlu1 %v360_v10  ;;  %367 = vadd.xlane.f32.xlu0 %v366_v6  ;;  %v430_v36 = vand.u32 127, %v1493_v33  ;;  %v416_v20 = vrot.slane %v399_v42, %v1416_v9  ;;  %v762_v33 = vld [vmem:[#allocation2 + $0x180] sm:$0xff] }
  0xbe   :  { %1029 = vmatpush1.bf16.msra.mxu1 %v1028_v32 }
  0xbf   :  { %v435_v22 = vadd.s32 4294967288, %v430_v36  ;;  %v442_v38 = vadd.s32 4294967280, %v430_v36  ;;  %v449_v40 = vadd.s32 4294967272, %v430_v36  ;;  %v433_v52 = vsub.s32 %v430_v36, %v1252_v12 }
  0xc1   :  { %370 = vadd.xlane.f32.xlu0 %v369_v58  ;;  %v438_v48 = vsub.s32 %v435_v22, %v1252_v12  ;;  %v445_v47 = vsub.s32 %v442_v38, %v1252_v12  ;;  %v452_v23 = vsub.s32 %v449_v40, %v1252_v12  ;;  %v715_v22 = vld [vmem:[#allocation2 + $0x8] sm:$0xff]  ;;  %v746_v40 = vld [vmem:[#allocation2 + $0x100] sm:$0xff] }
  0xc5   :  { %373 = vadd.xlane.f32.xlu0 %v372_v2 }
 0x141   :  { %v356_v34 = vpop.xlane.xlu1 %355 }
 0x142   :  { %v353_v11 = vpop.xlane.xlu0 %352  ;;  %v376_v51 = vmul.f32 0.00390625, %v356_v34  ;;  %v730_v34 = vld [vmem:[#allocation2 + $0x80] sm:$0xff] }
 0x143   :  { %v375_v53 = vmul.f32 0.00390625, %v353_v11  ;;  %v731_v11 = vld [vmem:[#allocation2 + $0x88] sm:$0xff] }
 0x144   :  { %v439_v60 = vrot.slane %v376_v51, %v438_v48  ;;  %v1030_v36 = vpack.c.bf16 %v731_v11, %v730_v34  ;;  %v721_v34 = vld [vmem:[#allocation2 + $0x38] sm:$0xff]  ;;  %v752_v11 = vld [vmem:[#allocation2 + $0x130] sm:$0xff] }
 0x145   :  { %v434_v0 = vrot.slane %v375_v53, %v433_v52  ;;  %v764_v53 = vld [vmem:[#allocation2 + $0x190] sm:$0xff] }
 0x146   :  { %v359_v37 = vpop.xlane.xlu1 %358  ;;  %v365_v13 = vpop.xlane.xlu0 %364  ;;  %1031 = vmatprep.subr.bf16.mxu0 %v1030_v36  ;;  %v753_v36 = vld [vmem:[#allocation2 + $0x138] sm:$0xff] }
 0x147   :  { %v377_v54 = vmul.f32 0.00390625, %v359_v37  ;;  %v379_v55 = vmul.f32 0.00390625, %v365_v13  ;;  %v441_v58 = vsel %vm440_vm0, %v439_v60, %v434_v0  ;;  %v763_v37 = vld [vmem:[#allocation2 + $0x188] sm:$0xff]  ;;  %v714_v13 = vld [vmem:[#allocation2] sm:$0xff] }
 0x148   :  { %v1062_v38 = vpack.c.bf16 %v763_v37, %v762_v33  ;;  %v738_v37 = vld [vmem:[#allocation2 + $0xc0] sm:$0xff] }
 0x149   :  { %v446_v6 = vrot.slane %v377_v54, %v445_v47  ;;  %v459_v5 = vrot.slane %v379_v55, %v433_v52  ;;  %v733_v52 = vld [vmem:[#allocation2 + $0x98] sm:$0xff] }
 0x14a   :  { %v368_v39 = vpop.xlane.xlu0 %367  ;;  %v362_v50 = vpop.xlane.xlu1 %361  ;;  %1063 = vmatprep.subr.bf16.mxu1 %v1062_v38  ;;  %v717_v55 = vld [vmem:[#allocation2 + $0x18] sm:$0xff] }
 0x14b   :  { %v380_v35 = vmul.f32 0.00390625, %v368_v39  ;;  %v378_v59 = vmul.f32 0.00390625, %v362_v50  ;;  %v448_v2 = vsel %vm447_vm1, %v446_v6, %v441_v58  ;;  %v1032_v39 = vpack.c.bf16 %v715_v22, %v714_v13  ;;  %v732_v50 = vld [vmem:[#allocation2 + $0x90] sm:$0xff]  ;;  %v739_v13 = vld [vmem:[#allocation2 + $0xc8] sm:$0xff] }
 0x14c   :  { %v1076_v22 = vpack.c.bf16 %v753_v36, %v752_v11  ;;  %v1046_v38 = vpack.c.bf16 %v739_v13, %v738_v37  ;;  %v684_v11 = vld [vmem:[%s1485_s6] sm:$0xf] }
 0x14d   :  { %v463_v1 = vrot.slane %v380_v35, %v438_v48  ;;  %v453_v28 = vrot.slane %v378_v59, %v452_v23  ;;  %v747_v48 = vld [vmem:[#allocation2 + $0x108] sm:$0xff]  ;;  %v765_v35 = vld [vmem:[#allocation2 + $0x198] sm:$0xff] }
 0x14e   :  { %v371_v56 = vpop.xlane.xlu0 %370  ;;  %v1064_v51 = vpack.c.bf16 %v747_v48, %v746_v40  ;;  %v1066_v54 = vpack.c.bf16 %v765_v35, %v764_v53  ;;  %v771_v40 = vld [vmem:[#allocation2 + $0x1c8] sm:$0xff]  ;;  %v722_v48 = vld [vmem:[#allocation2 + $0x40] sm:$0xff] }
 0x14f   :  { %v381_v24 = vmul.f32 0.00390625, %v371_v56  ;;  %v464_v62 = vsel %vm440_vm0, %v463_v1, %v459_v5  ;;  %v455_v7 = vsel %vm454_vm2, %v453_v28, %v448_v2  ;;  %v716_v56 = vld [vmem:[#allocation2 + $0x10] sm:$0xff]  ;;  %v755_v53 = vld [vmem:[#allocation2 + $0x148] sm:$0xff] }
 0x150   :  { %v1036_v59 = vpack.c.bf16 %v717_v55, %v716_v56  ;;  %v772_v56 = vld [vmem:[#allocation2 + $0x1d0] sm:$0xff] }
 0x151   :  { %v468_v4 = vrot.slane %v381_v24, %v445_v47  ;;  %v1034_v47 = vpack.c.bf16 %v733_v52, %v732_v50  ;;  %v749_v24 = vld [vmem:[#allocation2 + $0x118] sm:$0xff]  ;;  %v754_v52 = vld [vmem:[#allocation2 + $0x140] sm:$0xff] }
 0x152   :  { %v374_v10 = vpop.xlane.xlu0 %373  ;;  %v1080_v55 = vpack.c.bf16 %v755_v53, %v754_v52 }
 0x153   :  { %v382_v57 = vmul.f32 0.00390625, %v374_v10  ;;  %v469_v61 = vsel %vm447_vm1, %v468_v4, %v464_v62 }
 0x155   :  { %v473_v63 = vrot.slane %v382_v57, %v452_v23  ;;  %v748_v23 = vld [vmem:[#allocation2 + $0x110] sm:$0xff] }
 0x156   :  { %v1068_v60 = vpack.c.bf16 %v749_v24, %v748_v23  ;;  %v724_v24 = vld [vmem:[#allocation2 + $0x50] sm:$0xff] }
 0x157   :  { %v474_v3 = vsel %vm454_vm2, %v473_v63, %v469_v61 }
 0x158   :  { %v476_v8 = vsel %vm475_vm3, %v474_v3, %v455_v7 }
 0x159   :  { %941 = vmatmul.mubr.msk.f32.vlgmr.msra.gmra.mrb[0].mxu0 %vm477_vm4, %v476_v8  ;;  %942 = vmatmul.mubr.msk.f32.vlgmr.msra.gmra.mrb[0].mxu1 %vm477_vm4, %v476_v8 }
 0x15a   :  { %1033 = vmatpush3.bf16.msra.mxu0 %v1032_v39  ;;  %1065 = vmatpush3.bf16.msra.mxu1 %v1064_v51  ;;  %v770_v39 = vld [vmem:[#allocation2 + $0x1c0] sm:$0xff]  ;;  %v723_v51 = vld [vmem:[#allocation2 + $0x48] sm:$0xff] }
 0x15b   :  { %1035 = vmatprep.subr.bf16.mxu0 %v1034_v47  ;;  %1067 = vmatprep.subr.bf16.mxu1 %v1066_v54  ;;  %v1078_v50 = vpack.c.bf16 %v771_v40, %v770_v39  ;;  %v1048_v35 = vpack.c.bf16 %v723_v51, %v722_v48  ;;  %v740_v47 = vld [vmem:[#allocation2 + $0xd0] sm:$0xff]  ;;  %v741_v54 = vld [vmem:[#allocation2 + $0xd8] sm:$0xff]  ;;  %v701_v39 = vrot.slane %v684_v11, %v1416_v9 }
 0x15c   :  { %v1050_v23 = vpack.c.bf16 %v741_v54, %v740_v47  ;;  %v689_v40 = vrot.slane %v684_v11, %v1265_v17  ;;  %v697_v48 = vrot.slane %v684_v11, %v1262_v16 }
 0x15e   :  { %1037 = vmatpush3.bf16.msra.mxu0 %v1036_v59  ;;  %1069 = vmatpush3.bf16.msra.mxu1 %v1068_v60  ;;  %v773_v59 = vld [vmem:[#allocation2 + $0x1d8] sm:$0xff] }
 0x15f   :  { %v725_v60 = vld [vmem:[#allocation2 + $0x58] sm:$0xff] }
 0x22c   :  { %v546_v19 = vpop.f32.mrb[0].mxu0  ;;  %v617_v41 = vpop.f32.mrb[0].mxu1 }
 0x22d   :  { %v547_v25 = vadd.f32 %v546_v19, %v404_v14  ;;  %v548_v26 = vpop.f32.mrb[1].mxu0  ;;  %v619_v46 = vpop.f32.mrb[1].mxu1  ;;  %v618_v27 = vadd.f32 %v617_v41, %v412_v15  ;;  %v734_v14 = vld [vmem:[#allocation2 + $0xa0] sm:$0xff]  ;;  %v735_v15 = vld [vmem:[#allocation2 + $0xa8] sm:$0xff] }
 0x22e   :  { %v549_v49 = vadd.f32 %v548_v26, %v408_v45  ;;  %v620_v43 = vadd.f32 %v619_v46, %v416_v20  ;;  %v766_v45 = vld [vmem:[#allocation2 + $0x1a0] sm:$0xff]  ;;  %v1038_v19 = vpack.c.bf16 %v735_v15, %v734_v14  ;;  %v767_v41 = vld [vmem:[#allocation2 + $0x1a8] sm:$0xff] }
 0x22f   :  { %v623_v29 = vsel %vm622_vm5, %v547_v25, 0.0  ;;  %v626_v44 = vsel %vm622_vm5, %v618_v27, 0.0  ;;  %v718_v20 = vld [vmem:[#allocation2 + $0x20] sm:$0xff]  ;;  %v1070_v26 = vpack.c.bf16 %v767_v41, %v766_v45  ;;  %v759_v15 = vld [vmem:[#allocation2 + $0x168] sm:$0xff]  ;;  %v744_v45 = vld [vmem:[#allocation2 + $0xf0] sm:$0xff] }
 0x230   :  { %v624_v12 = vsel %vm622_vm5, %v549_v49, 0.0  ;;  %v628_v21 = vsel %vm622_vm5, %v620_v43, 0.0  ;;  %1039 = vmatprep.subr.bf16.mxu0 %v1038_v19  ;;  %v745_v19 = vld [vmem:[#allocation2 + $0xf8] sm:$0xff]  ;;  %v776_v41 = vld [vmem:[#allocation2 + $0x1f0] sm:$0xff] }
 0x231   :  { %v625_v30 = vadd.f32 %v624_v12, %v623_v29  ;;  %v736_v29 = vld [vmem:[#allocation2 + $0xb0] sm:$0xff]  ;;  %1071 = vmatprep.subr.bf16.mxu1 %v1070_v26 }
 0x233   :  { %v627_v31 = vadd.f32 %v626_v44, %v625_v30  ;;  %v768_v30 = vld [vmem:[#allocation2 + $0x1b0] sm:$0xff]  ;;  %v769_v44 = vld [vmem:[#allocation2 + $0x1b8] sm:$0xff] }
 0x235   :  { %v629_v32 = vadd.f32 %v628_v21, %v627_v31  ;;  %v1074_v21 = vpack.c.bf16 %v769_v44, %v768_v30 }
 0x237   :  { %630 = vadd.xlane.f32.xlu1 %v629_v32  ;;  %v720_v32 = vld [vmem:[#allocation2 + $0x30] sm:$0xff] }
 0x238   :  { %v1044_v33 = vpack.c.bf16 %v721_v34, %v720_v32  ;;  %v658_v34 = vld [vmem:[%s1484_s5] sm:$0xf] }
 0x239   :  { %v675_v36 = vrot.slane %v658_v34, %v1416_v9  ;;  %v663_v37 = vrot.slane %v658_v34, %v1265_v17  ;;  %v671_v13 = vrot.slane %v658_v34, %v1262_v16 }
 0x2c4   :  { %v631_v0 = vpop.xlane.xlu1 %630 }
 0x2c5   :  { %v633_v1 = vmul.f32 0.001953125, %v631_v0  ;;  %v1082_v0 = vpack.c.bf16 %v773_v59, %v772_v56 }
 0x2c7   :  { %v1426_v6 = vsub.f32 %v547_v25, %v633_v1  ;;  %v1428_v4 = vsub.f32 %v549_v49, %v633_v1  ;;  %v1430_v10 = vsub.f32 %v618_v27, %v633_v1  ;;  %v1432_v5 = vsub.f32 %v620_v43, %v633_v1  ;;  %v719_v25 = vld [vmem:[#allocation2 + $0x28] sm:$0xff]  ;;  %v750_v27 = vld [vmem:[#allocation2 + $0x120] sm:$0xff]  ;;  %v737_v43 = vld [vmem:[#allocation2 + $0xb8] sm:$0xff] }
 0x2c8   :  { %v1040_v46 = vpack.c.bf16 %v719_v25, %v718_v20  ;;  %v751_v49 = vld [vmem:[#allocation2 + $0x128] sm:$0xff]  ;;  %v1042_v31 = vpack.c.bf16 %v737_v43, %v736_v29  ;;  %v756_v1 = vld [vmem:[#allocation2 + $0x150] sm:$0xff]  ;;  %v777_v20 = vld [vmem:[#allocation2 + $0x1f8] sm:$0xff] }
 0x2c9   :  { %v638_v28 = vmul.f32 %v1426_v6, %v1426_v6  ;;  %v639_v57 = vmul.f32 %v1428_v4, %v1428_v4  ;;  %v640_v58 = vmul.f32 %v1430_v10, %v1430_v10  ;;  %v641_v62 = vmul.f32 %v1432_v5, %v1432_v5  ;;  %v761_v43 = vld [vmem:[#allocation2 + $0x178] sm:$0xff] }
 0x2ca   :  { %v1072_v12 = vpack.c.bf16 %v751_v49, %v750_v27  ;;  %1041 = vmatpush3.bf16.msra.mxu0 %v1040_v46  ;;  %v1058_v46 = vpack.c.bf16 %v745_v19, %v744_v45  ;;  %v728_v27 = vld [vmem:[#allocation2 + $0x70] sm:$0xff]  ;;  %v729_v49 = vld [vmem:[#allocation2 + $0x78] sm:$0xff]  ;;  %v1090_v29 = vpack.c.bf16 %v777_v20, %v776_v41 }
 0x2cb   :  { %v642_v63 = vsel %vm622_vm5, %v638_v28, 0.0  ;;  %v643_v2 = vsel %vm622_vm5, %v639_v57, 0.0  ;;  %v645_v7 = vsel %vm622_vm5, %v640_v58, 0.0  ;;  %v647_v8 = vsel %vm622_vm5, %v641_v62, 0.0  ;;  %1043 = vmatprep.subr.bf16.mxu0 %v1042_v31  ;;  %v757_v28 = vld [vmem:[#allocation2 + $0x158] sm:$0xff]  ;;  %v742_v57 = vld [vmem:[#allocation2 + $0xe0] sm:$0xff] }
 0x2cc   :  { %v644_v61 = vadd.f32 %v643_v2, %v642_v63  ;;  %1073 = vmatpush3.bf16.msra.mxu1 %v1072_v12  ;;  %v743_v58 = vld [vmem:[#allocation2 + $0xe8] sm:$0xff]  ;;  %v774_v62 = vld [vmem:[#allocation2 + $0x1e0] sm:$0xff]  ;;  %v1052_v2 = vpack.c.bf16 %v725_v60, %v724_v24  ;;  %v760_v12 = vld [vmem:[#allocation2 + $0x170] sm:$0xff]  ;;  %v1060_v30 = vpack.c.bf16 %v729_v49, %v728_v27 }
 0x2cd   :  { %1075 = vmatprep.subr.bf16.mxu1 %v1074_v21  ;;  %v775_v63 = vld [vmem:[#allocation2 + $0x1e8] sm:$0xff]  ;;  %v1092_v44 = vpack.c.bf16 %v761_v43, %v760_v12 }
 0x2ce   :  { %v646_v3 = vadd.f32 %v645_v7, %v644_v61  ;;  %1045 = vmatpush3.bf16.msra.mxu0 %v1044_v33  ;;  %v1084_v61 = vpack.c.bf16 %v757_v28, %v756_v1  ;;  %v1054_v7 = vpack.c.bf16 %v743_v58, %v742_v57  ;;  %v1086_v14 = vpack.c.bf16 %v775_v63, %v774_v62 }
 0x2cf   :  { %1047 = vmatprep.subr.bf16.mxu0 %v1046_v38  ;;  %v667_v33 = vrot.slane %v658_v34, %v1494_v18  ;;  %v693_v38 = vrot.slane %v684_v11, %v1494_v18 }
 0x2d0   :  { %v648_v42 = vadd.f32 %v647_v8, %v646_v3  ;;  %1077 = vmatpush3.bf16.msra.mxu1 %v1076_v22  ;;  %v726_v3 = vld [vmem:[#allocation2 + $0x60] sm:$0xff]  ;;  %v727_v8 = vld [vmem:[#allocation2 + $0x68] sm:$0xff] }
 0x2d1   :  { %1079 = vmatprep.subr.bf16.mxu1 %v1078_v50  ;;  %v1056_v25 = vpack.c.bf16 %v727_v8, %v726_v3 }
 0x2d2   :  { %649 = vadd.xlane.f32.xlu0 %v648_v42  ;;  %1049 = vmatpush3.bf16.msra.mxu0 %v1048_v35  ;;  %v758_v42 = vld [vmem:[#allocation2 + $0x160] sm:$0xff] }
 0x2d3   :  { %1051 = vmatprep.subr.bf16.mxu0 %v1050_v23  ;;  %v1088_v26 = vpack.c.bf16 %v759_v15, %v758_v42 }
 0x2d4   :  { %1081 = vmatpush3.bf16.msra.mxu1 %v1080_v55 }
 0x2d5   :  { %1083 = vmatprep.subr.bf16.mxu1 %v1082_v0 }
 0x2d6   :  { %1053 = vmatpush3.bf16.msra.mxu0 %v1052_v2 }
 0x2d7   :  { %1055 = vmatprep.subr.bf16.mxu0 %v1054_v7 }
 0x2d8   :  { %1085 = vmatpush3.bf16.msra.mxu1 %v1084_v61 }
 0x2d9   :  { %1087 = vmatprep.subr.bf16.mxu1 %v1086_v14 }
 0x2da   :  { %1057 = vmatpush3.bf16.msra.mxu0 %v1056_v25 }
 0x2db   :  { %1059 = vmatprep.subr.bf16.mxu0 %v1058_v46 }
 0x2dc   :  { %1089 = vmatpush3.bf16.msra.mxu1 %v1088_v26 }
 0x2dd   :  { %1091 = vmatprep.subr.bf16.mxu1 %v1090_v29 }
 0x2de   :  { %1061 = vmatpush3.bf16.msra.mxu0 %v1060_v30 }
 0x2e0   :  { %1093 = vmatpush3.bf16.msra.mxu1 %v1092_v44 }
 0x35f   :  { %v650_v31 = vpop.xlane.xlu0 %649 }
 0x360   :  { %v651_v21 = vmul.f32 0.001953125, %v650_v31 }
 0x362   :  { %v652_v32 = vadd.f32 1e-05, %v651_v21 }
 0x364   :  { %1107 = vrsqrt.f32 %v652_v32 }
 0x36e   :  { %v1108_v22 = vpop.eup %1107 }
 0x36f   :  { %v655_v50 = vmul.f32 %v1108_v22, %v1428_v4  ;;  %v657_v51 = vmul.f32 %v1108_v22, %v1432_v5  ;;  %v654_v52 = vmul.f32 %v1108_v22, %v1426_v6  ;;  %v656_v53 = vmul.f32 %v1108_v22, %v1430_v10  ;;  %v943_v10 = vld [vmem:[%s1487_s8] ss:$0 sm:$0xff] }
 0x371   :  { %v681_v35 = vmul.f32 %v667_v33, %v655_v50  ;;  %v683_v47 = vmul.f32 %v675_v36, %v657_v51  ;;  %v680_v54 = vmul.f32 %v663_v37, %v654_v52  ;;  %v682_v56 = vmul.f32 %v671_v13, %v656_v53 }
 0x373   :  { %v707_v55 = vadd.f32 %v693_v38, %v681_v35  ;;  %v709_v18 = vadd.f32 %v701_v39, %v683_v47  ;;  %v706_v23 = vadd.f32 %v689_v40, %v680_v54  ;;  %v708_v9 = vadd.f32 %v697_v48, %v682_v56 }
 0x375   :  { %v711_v59 = vmax.f32 %v707_v55, 0.0  ;;  %v713_v17 = vmax.f32 %v709_v18, 0.0  ;;  %v710_v24 = vmax.f32 %v706_v23, 0.0  ;;  %v712_v16 = vmax.f32 %v708_v9, 0.0 }
 0x377   :  { %849 = vmatprep.mubr.f32.mxu0 %v711_v59  ;;  %919 = vmatprep.mubr.f32.mxu1 %v713_v17 }
 0x378   :  { %850 = vmatmul.mubr.f32.vlgmr.msra.gmra.mrb[2].mxu0 %v710_v24  ;;  %920 = vmatmul.mubr.f32.vlgmr.msra.gmra.mrb[2].mxu1 %v712_v16 }
 0x44b   :  { %v976_v4 = vpop.f32.mrb[2].mxu0  ;;  %v1011_v6 = vpop.f32.mrb[2].mxu1 }
 0x44c   :  { %v977_v5 = vpop.f32.mrb[3].mxu0  ;;  %v1012_v60 = vpop.f32.mrb[3].mxu1 }
 0x44d   :  { %v978_v0 = vadd.f32 %v977_v5, %v976_v4  ;;  %v1013_v1 = vadd.f32 %v1012_v60, %v1011_v6 }
 0x44f   :  { %v852_v28 = vadd.f32 %v978_v0, %v943_v10 }
 0x451   :  { %v922_v57 = vadd.f32 %v1013_v1, %v852_v28 }
 0x453   :  { %925 = vst [vmem:[#allocation5] sm:$0x3] %v922_v57 }
 0x454   :  { %1142 = shalt.err (!%p1139_p12)
}
 0x455   :  { %s1143_s8 = scalar_lea.hbm %s1488_s9, 32 }
 0x456   :  { %p1144_p13 = scmp.ne.s32.totalorder %s1488_s9, %s1143_s8  ;;  %p1147_p0 = scmp.lt.u32.totalorder %s1143_s8, %s1488_s9 }
 0x458   :  { %p1149_p1 = pnand %p1147_p0, %p1144_p13 }
 0x45a   :  { %1152 = shalt.err (!%p1149_p1)
}
 0x45b   :  { %935 = dma.vmem_to_hbm [thread:$0]  %s933_s29, 32, %s1488_s9, [#allocation4]  }
 0x45c   :  { %1155 = dma.done.wait [#allocation4], 32  }
 0x45d   :  { %1156 = vsyncadd [#allocation4], 4294967264 }
 0x45e   :  { %939 = vsyncpa [#allocation3], 1 }
 0x45f   :  { %940 = vsyncpa [#allocation4], 1 }

</bundles_post_ra>
